<compile_context>
chip_gen: v5e
topology: v5e:2x2
jax: 0.10.0
libtpu: 0.0.40
codegen_flags: <defaults>
</compile_context>

<pallas_src>
import jax
import jax.numpy as jnp
from jax import lax
from jax.experimental import pallas as pl
from jax.experimental.pallas import tpu as pltpu


def _round_up(x, m):
    return ((x + m - 1) // m) * m


def _cdiv(a, b):
    return (a + b - 1) // b


def _linear_kernel_single_k(x_ref, w_ref, o_ref):
    # y_tile = x_tile @ w_tile.T — contraction on the last axis of both
    # operands; weight stays in (out_features, in_features) layout.
    o_ref[...] = lax.dot_general(
        x_ref[...],
        w_ref[...],
        dimension_numbers=(((1,), (1,)), ((), ())),
        preferred_element_type=jnp.float32,
    ).astype(o_ref.dtype)


def _linear_kernel_multi_k(x_ref, w_ref, o_ref):
    # Accumulate directly into the f32 output block (it stays VMEM-resident
    # across the K axis because its block index ignores k). No scratch.
    @pl.when(pl.program_id(2) == 0)
    def _():
        o_ref[...] = jnp.zeros_like(o_ref)

    o_ref[...] += lax.dot_general(
        x_ref[...],
        w_ref[...],
        dimension_numbers=(((1,), (1,)), ((), ())),
        preferred_element_type=jnp.float32,
    )


def single_layer_nn(x, weight, *, tm_cap=512, tn_cap=512, tk_cap=2048):
    """Pallas equivalent of SingleLayerNN.forward.

    x:      (B, in_features)              float32
    weight: (out_features, in_features)   float32  (PyTorch nn.Linear layout)
    returns (B, out_features)             float32  (= x @ weight.T)
    """
    M, K = x.shape
    N, K2 = weight.shape
    assert K == K2, "in_features mismatch between x and weight"

    # ---- tile selection ---------------------------------------------------
    Mp8 = _round_up(M, 8)        # sublane multiple
    Np128 = _round_up(N, 128)    # lane multiple (output lane-dense)
    Kp128 = _round_up(K, 128)    # lane multiple (input lane axis)

    tm = min(tm_cap, Mp8)
    tn = min(tn_cap, Np128)

    # Full-K single reduction step when K is modest; otherwise balanced tiles.
    if Kp128 <= tk_cap:
        tk = Kp128
    else:
        n_k = _cdiv(Kp128, tk_cap)
        tk = _round_up(_cdiv(Kp128, n_k), 128)

    # Megacore (v7x) occupancy: with a single M tile, prefer >= 2 N tiles.
    if _cdiv(Mp8, tm) == 1 and _cdiv(Np128, tn) < 2 and Np128 >= 256:
        tn = max(128, ((Np128 // 2) // 128) * 128)

    Mp = _round_up(M, tm)
    Np = _round_up(N, tn)
    Kp = _round_up(K, tk)

    # ---- padding (only when shapes aren't already tile multiples) ----------
    # Zero padding contributes exact zeros to the contraction.
    # TODO(synk): for non-128-multiple N/K, mask the tails in-kernel instead
    # of materializing a padded HBM copy of the (static) weight.
    xp = x if (Mp == M and Kp == K) else jnp.pad(x, ((0, Mp - M), (0, Kp - K)))
    wp = (
        weight
        if (Np == N and Kp == K)
        else jnp.pad(weight, ((0, Np - N), (0, Kp - K)))
    )

    grid_m, grid_n, grid_k = Mp // tm, Np // tn, Kp // tk

    # Double-buffered VMEM working set + headroom, capped v7x-safe (< 56 MiB).
    tile_bytes = 4 * (2 * tm * tk + 2 * tn * tk + 2 * tm * tn)
    vmem_limit = int(min(max(tile_bytes + (8 << 20), 16 << 20), 56 << 20))

    # Honest bytes_accessed: x is re-read grid_n times, W grid_m times.
    cost = pl.CostEstimate(
        flops=2 * Mp * Np * Kp,
        transcendentals=0,
        bytes_accessed=4 * (Mp * Kp * grid_n + Np * Kp * grid_m + Mp * Np),
    )

    if grid_k == 1:
        kernel = _linear_kernel_single_k
        grid = (grid_m, grid_n)
        in_specs = [
            pl.BlockSpec((tm, tk), lambda i, j: (i, 0)),  # x tile
            pl.BlockSpec((tn, tk), lambda i, j: (j, 0)),  # weight tile
        ]
        out_spec = pl.BlockSpec((tm, tn), lambda i, j: (i, j))
        dims = ("parallel", "parallel")
    else:
        kernel = _linear_kernel_multi_k
        grid = (grid_m, grid_n, grid_k)  # reduction axis last
        in_specs = [
            pl.BlockSpec((tm, tk), lambda i, j, k: (i, k)),  # x tile
            pl.BlockSpec((tn, tk), lambda i, j, k: (j, k)),  # weight tile
        ]
        out_spec = pl.BlockSpec((tm, tn), lambda i, j, k: (i, j))
        dims = ("parallel", "parallel", "arbitrary")

    yp = pl.pallas_call(
        kernel,
        out_shape=jax.ShapeDtypeStruct((Mp, Np), jnp.float32),
        grid=grid,
        in_specs=in_specs,
        out_specs=out_spec,
        compiler_params=pltpu.CompilerParams(
            dimension_semantics=dims,
            vmem_limit_bytes=vmem_limit,
        ),
        cost_estimate=cost,
    )(xp, wp)

    if Mp != M or Np != N:
        yp = yp[:M, :N]
    return yp.astype(x.dtype)


if __name__ == "__main__":
    key = jax.random.PRNGKey(0)
    kx, kw = jax.random.split(key)

    batch = 8
    in_features = 32
    out_features = 16

    x = jax.random.normal(kx, (batch, in_features), dtype=jnp.float32)
    # nn.init.normal_(weight, 0.0, 1.0) -> standard normal, PyTorch layout.
    weight = jax.random.normal(kw, (out_features, in_features), dtype=jnp.float32)

    y = single_layer_nn(x, weight)
    jax.block_until_ready(y)

    # Reference check against plain JAX (x @ W.T).
    y_ref = x @ weight.T
    assert y.shape == (batch, out_features)
    assert jnp.allclose(y, y_ref, atol=1e-5, rtol=1e-5)

    print("KERNEL_OK")
</pallas_src>

<mosaic_0001>
module attributes {stable_mosaic.version = 11 : i64} {
  func.func @_linear_kernel_single_k(%arg0: i32, %arg1: i32, %arg2: memref<8x128xf32, #tpu.memory_space<vmem>>, %arg3: memref<128x128xf32, #tpu.memory_space<vmem>>, %arg4: memref<8x128xf32, #tpu.memory_space<vmem>>) attributes {dimension_semantics = [#tpu.dimension_semantics<parallel>, #tpu.dimension_semantics<parallel>], iteration_bounds = array<i64: 1, 1>, scalar_prefetch = 0 : i64, scratch_operands = 0 : i64, tpu.core_type = #tpu.core_type<tc>, window_params = [{transform_indices = @transform_0, window_bounds = array<i64: 8, 128>}, {transform_indices = @transform_1, window_bounds = array<i64: 128, 128>}, {transform_indices = @transform_2, window_bounds = array<i64: 8, 128>}]} {
    %c0 = arith.constant 0 : index
    %c0_0 = arith.constant 0 : index
    %0 = vector.load %arg2[%c0, %c0_0] : memref<8x128xf32, #tpu.memory_space<vmem>>, vector<8x128xf32>
    %c0_1 = arith.constant 0 : index
    %c0_2 = arith.constant 0 : index
    %1 = vector.load %arg3[%c0_1, %c0_2] : memref<128x128xf32, #tpu.memory_space<vmem>>, vector<128x128xf32>
    %cst = arith.constant dense<0.000000e+00> : vector<8x128xf32>
    %2 = tpu.matmul %0, %1, %cst {dimension_numbers = #tpu.dot_dimension_numbers<[1], [1], [0], [0], [0, 0, 1, 0], [], []>} : vector<8x128xf32>, vector<128x128xf32>, vector<8x128xf32> -> vector<8x128xf32>
    %c0_3 = arith.constant 0 : index
    %c0_4 = arith.constant 0 : index
    %3 = vector.load %arg4[%c0_3, %c0_4] : memref<8x128xf32, #tpu.memory_space<vmem>>, vector<8x128xf32>
    tpu.vector_store %arg4[%c0_3, %c0_4], %2 {strides = array<i32>} : memref<8x128xf32, #tpu.memory_space<vmem>>, vector<8x128xf32>,
    return
  }
  func.func @transform_0(%arg0: i32, %arg1: i32) -> (i32, i32) {
    %c0_i32 = arith.constant 0 : i32
    %c0_i32_0 = arith.constant 0 : i32
    return %arg0, %c0_i32 : i32, i32
  }
  func.func @transform_1(%arg0: i32, %arg1: i32) -> (i32, i32) {
    %c0_i32 = arith.constant 0 : i32
    %c0_i32_0 = arith.constant 0 : i32
    return %arg1, %c0_i32 : i32, i32
  }
  func.func @transform_2(%arg0: i32, %arg1: i32) -> (i32, i32) {
    %c0_i32 = arith.constant 0 : i32
    return %arg0, %arg1 : i32, i32
  }
}

</mosaic_0001>

<bundles_post_ra>
// kernel: tpu_custom_call.1
= control target key start
LH: loop header
LB: loop body
LE: loop exit
PB: predicated region body
PF: predicated region fallthrough
CT: control target
= control target key end

     0   :  { %7 = vsyncpa [#allocation3], 0  ;;  %s210_s0 = inlined_call_operand.hbm [shape: f32[8,128], index: 0, kind: input, shape index: {}]   ;;  %s211_s1 = inlined_call_operand.hbm [shape: f32[128,128], index: 1, kind: input, shape index: {}]   ;;  %s212_s2 = inlined_call_operand.hbm [shape: f32[8,128], index: 2, kind: output, shape index: {}]  }
   0x1   :  { %8 = vsyncpa [#allocation6], 0 }
   0x2   :  { %9 = vsyncpa [#allocation4], 0  ;;  %s15_s11 = sshll.u32 %s210_s0, 4  ;;  %s181_s12 = smov [#allocation2]   ;;  %s16_s11 = int_to_ptr.hbm [resolvable:$true] %s15_s11 }
   0x3   :  { %s17_s13 = sshll.u32 %s181_s12, 4  ;;  %s25_s16 = sshll.u32 %s211_s1, 4  ;;  %s18_s13 = int_to_ptr.vmem [resolvable:$true] %s17_s13  ;;  %s26_s16 = int_to_ptr.hbm [resolvable:$true] %s25_s16 }
   0x4   :  { %20 = dma.hbm_to_vmem [thread:$0]  %s16_s11, 128, %s18_s13, [#allocation3]  }
   0x5   :  { %s182_s17 = smov [#allocation5]   ;;  %s183_s19 = smov 128  }
   0x6   :  { %s27_s18 = sshll.u32 %s182_s17, 4  ;;  %s184_s20 = smov 8   ;;  %s28_s18 = int_to_ptr.vmem [resolvable:$true] %s27_s18 }
   0x7   :  { %33 = dma.hbm_to_vmem [thread:$0]  %s26_s16, 2048, %s28_s18, [#allocation6], %s183_s19, %s183_s19, %s184_s20  }
   0x8   :  { %175 = dma.done.wait [#allocation3], 128  }
   0x9   :  { %176 = vsyncadd [#allocation3], 4294967168 }
   0xa   :  { %177 = dma.done.wait [#allocation6], 2048  }
   0xb   :  { %178 = vsyncadd [#allocation6], 4294965248  ;;  %v58_v0 = vld [vmem:[#allocation5 + $0x78] sm:$0xff]  ;;  %v57_v1 = vld [vmem:[#allocation5 + $0x70] sm:$0xff]  ;;  %s185_s0 = smov [#allocation7]   ;;  %s87_s23 = sshll.u32 %s212_s2, 4  ;;  %s88_s23 = int_to_ptr.hbm [resolvable:$true] %s87_s23 }
   0xc   :  { %59 = vmatpush.xpose.msra.mxu0 %v58_v0  ;;  %v56_v2 = vld [vmem:[#allocation5 + $0x68] sm:$0xff]  ;;  %v55_v3 = vld [vmem:[#allocation5 + $0x60] sm:$0xff]  ;;  %v54_v4 = vld [vmem:[#allocation5 + $0x58] sm:$0xff]  ;;  %s85_s1 = sshll.u32 %s185_s0, 4  ;;  %s86_s1 = int_to_ptr.vmem [resolvable:$true] %s85_s1 }
   0xd   :  { %v53_v5 = vld [vmem:[#allocation5 + $0x50] sm:$0xff]  ;;  %v52_v6 = vld [vmem:[#allocation5 + $0x48] sm:$0xff]  ;;  %v51_v7 = vld [vmem:[#allocation5 + $0x40] sm:$0xff] }
   0xe   :  { %v50_v8 = vld [vmem:[#allocation5 + $0x38] sm:$0xff]  ;;  %v49_v9 = vld [vmem:[#allocation5 + $0x30] sm:$0xff]  ;;  %v48_v10 = vld [vmem:[#allocation5 + $0x28] sm:$0xff] }
   0xf   :  { %v47_v11 = vld [vmem:[#allocation5 + $0x20] sm:$0xff]  ;;  %v46_v12 = vld [vmem:[#allocation5 + $0x18] sm:$0xff]  ;;  %v45_v13 = vld [vmem:[#allocation5 + $0x10] sm:$0xff] }
  0x10   :  { %60 = vmatpush.xpose.msra.mxu0 %v57_v1  ;;  %v44_v14 = vld [vmem:[#allocation5 + $0x8] sm:$0xff]  ;;  %v43_v15 = vld [vmem:[#allocation5] sm:$0xff]  ;;  %v42_v16 = vld [vmem:[#allocation2] sm:$0xff] }
  0x14   :  { %61 = vmatpush.xpose.msra.mxu0 %v56_v2 }
  0x18   :  { %62 = vmatpush.xpose.msra.mxu0 %v55_v3 }
  0x1c   :  { %63 = vmatpush.xpose.msra.mxu0 %v54_v4 }
  0x20   :  { %64 = vmatpush.xpose.msra.mxu0 %v53_v5 }
  0x24   :  { %65 = vmatpush.xpose.msra.mxu0 %v52_v6 }
  0x28   :  { %66 = vmatpush.xpose.msra.mxu0 %v51_v7 }
  0x2c   :  { %67 = vmatpush.xpose.msra.mxu0 %v50_v8 }
  0x30   :  { %68 = vmatpush.xpose.msra.mxu0 %v49_v9 }
  0x34   :  { %69 = vmatpush.xpose.msra.mxu0 %v48_v10 }
  0x38   :  { %70 = vmatpush.xpose.msra.mxu0 %v47_v11 }
  0x3c   :  { %71 = vmatpush.xpose.msra.mxu0 %v46_v12 }
  0x40   :  { %72 = vmatpush.xpose.msra.mxu0 %v45_v13 }
  0x44   :  { %73 = vmatpush.xpose.msra.mxu0 %v44_v14 }
  0x48   :  { %74 = vmatpush.xpose.msra.mxu0 %v43_v15 }
  0x4b   :  { %75 = vmatmul.f32.vlgmr.msra.gmra.mxu0 %v42_v16 }
  0xc8   :  { %v76_v17 = vpop.f32.mrf.mxu0 }
  0xc9   :  { %79 = vst [vmem:[#allocation7] sm:$0xff] %v76_v17 }
  0xca   :  { %90 = dma.vmem_to_hbm [thread:$0]  %s86_s1, 128, %s88_s23, [#allocation4]  }
  0xcb   :  { %179 = dma.done.wait [#allocation4], 128  }
  0xcc   :  { %180 = vsyncadd [#allocation4], 4294967168 }
  0xcd   :  { %95 = vsyncpa [#allocation3], 1 }
  0xce   :  { %96 = vsyncpa [#allocation6], 1 }
  0xcf   :  { %97 = vsyncpa [#allocation4], 1 }

</bundles_post_ra>
